<compile_context>
chip_gen: v6e
topology: v6e:2x2x1
jax: 0.10.0
libtpu: 0.0.40
codegen_flags: <defaults>
</compile_context>

<pallas_src>
import functools

import jax
import jax.numpy as jnp
import numpy as np
from jax import lax
from jax.experimental import pallas as pl
from jax.experimental.pallas import tpu as pltpu

_LANE = 128
_SUBLANE = 8


def _round_up(v, m):
    return ((v + m - 1) // m) * m


def _select_block_config():
    """Generation-aware client-block cap + scoped VMEM limit.

    v7x has 64 MiB VMEM per TensorCore (vs 128 MiB on v5e/v6e).  Working set
    (double-buffered blocks + in-kernel temporaries) is ~17 MiB at BC=2048 and
    ~34 MiB at BC=4096 with Kp=Dp=128, so both choices leave headroom.
    """
    try:
        vmem_cap = pltpu.get_tpu_info().vmem_capacity_bytes
    except Exception:
        vmem_cap = 128 * 1024 * 1024
    if vmem_cap <= 64 * 1024 * 1024:       # v7x-class
        return 2048, 48 * 1024 * 1024
    return 4096, 64 * 1024 * 1024           # v5e / v6e


# ----------------------------------------------------------------------------
# Pallas kernel: per-client-block distances, softmax, hard assignment, and
# fused MXU client reductions.  No carried state across grid iterations, so
# the client axis is megacore-parallel.
# ----------------------------------------------------------------------------
def _vwc_kernel(x_ref, c_ref, csq_ref, lg_ref, probs_ref, part_ref, *,
                num_clients, num_clusters, temperature):
    i = pl.program_id(0)

    C = num_clients
    K = num_clusters
    BC = x_ref.shape[0]          # client block rows (multiple of 8)
    Kp = lg_ref.shape[1]         # padded cluster dim (multiple of 128)

    x = x_ref[...]               # (BC, Dp) f32
    c = c_ref[...]               # (Kp, Dp) f32
    lg = lg_ref[...]             # (BC, Kp) f32
    csq_row = csq_ref[0:1, :]    # (1, Kp)  ||c||^2 (loop invariant, prehosted)

    # Validity masks for padded rows (clients) / columns (clusters).
    col = lax.broadcasted_iota(jnp.int32, (BC, Kp), 1)
    row = lax.broadcasted_iota(jnp.int32, (BC, Kp), 0)
    col_valid = col < K
    row_valid = (row + i * BC) < C

    # --- cdist(x_mean, centers) on the MXU: ||x||^2 + ||c||^2 - 2 x c^T -----
    xsq = jnp.sum(x * x, axis=1, keepdims=True)                      # (BC, 1)
    xc = lax.dot_general(x, c, (((1,), (1,)), ((), ())),
                         preferred_element_type=jnp.float32)         # (BC, Kp)
    dist = jnp.sqrt(jnp.maximum(xsq + csq_row - 2.0 * xc, 0.0))      # (BC, Kp)

    # --- softmax over clusters (padded columns masked to -inf-ish) ----------
    alogits = lg - dist * (1.0 / temperature)
    alogits = jnp.where(col_valid, alogits, -1e30)
    m = jnp.max(alogits, axis=1, keepdims=True)
    e = jnp.exp(alogits - m)
    denom = jnp.sum(e, axis=1, keepdims=True)
    probs = e * pl.reciprocal(denom, approx=True)                    # (BC, Kp)
    probs = jnp.where(row_valid, probs, 0.0)
    probs_ref[...] = probs

    # --- hard assignment from alogits (argmax monotone under softmax) -------
    # first-max index == torch.argmax / jnp.argmax semantics.
    is_max = (alogits == m) & col_valid
    first_idx = jnp.min(jnp.where(is_max, col, Kp), axis=1, keepdims=True)
    one_hot = jnp.where((col == first_idx) & row_valid, 1.0, 0.0)    # (BC, Kp)

    # --- fused axis-0 (client) reductions: ONE MXU matmul per block ---------
    # ones(8,BC) @ [probs | one_hot | probs*dist]  ->  (8, 3*Kp)
    # (all 8 rows identical; host consumes row 0 of each block).
    fused = jnp.concatenate([probs, one_hot, probs * dist], axis=1)  # (BC,3Kp)
    ones_c = jnp.ones((_SUBLANE, BC), jnp.float32)
    part_ref[...] = jnp.dot(ones_c, fused,
                            preferred_element_type=jnp.float32)      # (8,3Kp)


# ----------------------------------------------------------------------------
# Glue: PCA (reduce_dim) in plain JAX (sklearn-style SVD + sign flip + pad).
# TODO(synk): SVD/PCA has no clean Pallas TPU equivalent; kept in plain JAX.
# ----------------------------------------------------------------------------
def pca_reduce(proxy_points, pca_dim):
    num_clients, num_samples, feat_dim = proxy_points.shape
    real_dim = min(pca_dim, num_samples - 1, feat_dim)

    def one(arr):
        xc = arr - jnp.mean(arr, axis=0, keepdims=True)
        U, S, _ = jnp.linalg.svd(xc, full_matrices=False)
        # sklearn svd_flip (u-based sign convention)
        max_abs_rows = jnp.argmax(jnp.abs(U), axis=0)
        signs = jnp.sign(U[max_abs_rows, jnp.arange(U.shape[1])])
        U = U * signs[None, :]
        scores = U[:, :real_dim] * S[:real_dim][None, :]
        if pca_dim - real_dim > 0:
            scores = jnp.pad(scores, ((0, 0), (0, pca_dim - real_dim)))
        return scores.astype(jnp.float32)

    return jax.vmap(one)(proxy_points)


# ----------------------------------------------------------------------------
# Wrapper: reproduces VariationalWassersteinClustering.forward -> (probs, loss)
# ----------------------------------------------------------------------------
def vwc_forward(proxy_points, centers, logits, *, pca_dim=4,
                sinkhorn_reg=0.2, temperature=0.5):
    x = pca_reduce(proxy_points, pca_dim)                  # (C, S, pca_dim)
    x_mean = jnp.mean(x, axis=1).astype(jnp.float32)       # (C, D)
    centers = centers.astype(jnp.float32)
    logits = logits.astype(jnp.float32)

    C, D = x_mean.shape
    K = centers.shape[0]

    Dp = _round_up(max(D, _LANE), _LANE)
    Kp = _round_up(max(K, _LANE), _LANE)

    bc_cap, vmem_limit = _select_block_config()
    BC = min(bc_cap, _round_up(C, _SUBLANE))               # client block rows
    Cp = _round_up(C, BC)
    n_blocks = Cp // BC

    # Host-side zero padding to lane/sublane-friendly shapes (kept f32 for
    # accuracy; bf16 HBM staging is a possible further DMA saving at large C).
    x_p = jnp.zeros((Cp, Dp), jnp.float32).at[:C, :D].set(x_mean)
    c_p = jnp.zeros((Kp, Dp), jnp.float32).at[:K, :D].set(centers)
    l_p = jnp.zeros((Cp, Kp), jnp.float32).at[:C, :K].set(logits)
    csq_p = jnp.tile(jnp.sum(c_p * c_p, axis=1)[None, :], (_SUBLANE, 1))

    kernel = functools.partial(
        _vwc_kernel,
        num_clients=C,
        num_clusters=K,
        temperature=float(temperature),
    )

    probs_p, partials = pl.pallas_call(
        kernel,
        out_shape=(
            jax.ShapeDtypeStruct((Cp, Kp), jnp.float32),
            jax.ShapeDtypeStruct((n_blocks * _SUBLANE, 3 * Kp), jnp.float32),
        ),
        grid_spec=pltpu.PrefetchScalarGridSpec(
            num_scalar_prefetch=0,
            grid=(n_blocks,),
            in_specs=[
                pl.BlockSpec((BC, Dp), lambda i: (i, 0)),        # x_mean block
                pl.BlockSpec((Kp, Dp), lambda i: (0, 0)),        # centers
                pl.BlockSpec((_SUBLANE, Kp), lambda i: (0, 0)),  # ||c||^2 row
                pl.BlockSpec((BC, Kp), lambda i: (i, 0)),        # logits block
            ],
            out_specs=(
                pl.BlockSpec((BC, Kp), lambda i: (i, 0)),            # probs
                pl.BlockSpec((_SUBLANE, 3 * Kp), lambda i: (i, 0)),  # partials
            ),
        ),
        compiler_params=pltpu.CompilerParams(
            # No carried scratch across client blocks -> safe to shard the
            # client axis across both v7x TensorCores.
            dimension_semantics=("parallel",),
            vmem_limit_bytes=vmem_limit,
        ),
    )(x_p, c_p, csq_p, l_p)

    # ---- tiny O(K) finalize in plain JAX (exact divides) --------------------
    parts = partials.reshape(n_blocks, _SUBLANE, 3 * Kp)[:, 0, :]
    parts = jnp.sum(parts, axis=0)                          # (3*Kp,)
    sum_p = parts[:K]                                       # sum of probs
    counts = parts[Kp:Kp + K]                               # hard-assign counts
    distance_loss = jnp.sum(parts[2 * Kp:3 * Kp])           # padded lanes = 0

    cluster_probs = sum_p / C
    entropy = -jnp.sum(cluster_probs * jnp.log(cluster_probs + 1e-10))

    pdist = jnp.sqrt(jnp.maximum(
        jnp.sum((centers[:, None, :] - centers[None, :, :]) ** 2, -1), 0.0))
    pdist = pdist + jnp.eye(K, dtype=jnp.float32) * 1e10
    min_dist = -jnp.min(pdist)

    proportions = counts / jnp.sum(counts)
    gini = jnp.sum(proportions * (1.0 - proportions))

    mean_count = jnp.mean(counts)
    std_count = jnp.sqrt(jnp.mean((counts - mean_count) ** 2))
    imbalance = std_count / (mean_count + 1e-10)

    loss = (distance_loss - sinkhorn_reg * entropy + 0.2 * min_dist
            + 0.5 * gini + 0.8 * imbalance)

    return probs_p[:C, :K], loss


# ----------------------------------------------------------------------------
# Pure-JAX reference of the same forward (for a sanity check).
# ----------------------------------------------------------------------------
def vwc_forward_ref(proxy_points, centers, logits, *, pca_dim=4,
                    sinkhorn_reg=0.2, temperature=0.5):
    x = pca_reduce(proxy_points, pca_dim)
    x_mean = jnp.mean(x, axis=1)
    K = centers.shape[0]
    dist = jnp.sqrt(jnp.sum((x_mean[:, None, :] - centers[None, :, :]) ** 2, -1))
    assignment_logits = logits + (-dist / temperature)
    probs = jax.nn.softmax(assignment_logits, axis=1)
    cluster_probs = jnp.mean(probs, axis=0)
    entropy = -jnp.sum(cluster_probs * jnp.log(cluster_probs + 1e-10))
    pdist = jnp.sqrt(jnp.sum((centers[:, None, :] - centers[None, :, :]) ** 2, -1))
    pdist = pdist + jnp.eye(K) * 1e10
    min_dist = -jnp.min(pdist)
    assignments = jnp.argmax(probs, axis=1)
    counts = jnp.sum(jax.nn.one_hot(assignments, K), axis=0)
    proportions = counts / jnp.sum(counts)
    gini = jnp.sum(proportions * (1.0 - proportions))
    distance_loss = jnp.sum(probs * dist)
    entropy_reg = -sinkhorn_reg * entropy
    mean_count = jnp.mean(counts)
    std_count = jnp.sqrt(jnp.mean((counts - mean_count) ** 2))
    imbalance_penalty = std_count / (mean_count + 1e-10)
    loss = (distance_loss + entropy_reg + 0.2 * min_dist
            + 0.5 * gini + 0.8 * imbalance_penalty)
    return probs, loss


if __name__ == "__main__":
    # Small synthetic config consistent with the module's __init__/forward.
    num_clients, num_samples, feat_dim = 8, 8, 16
    num_clusters, pca_dim = 4, 4
    sinkhorn_reg, temperature = 0.2, 0.5

    key = jax.random.PRNGKey(0)
    k1, k2, k3 = jax.random.split(key, 3)
    proxy_points = jax.random.normal(
        k1, (num_clients, num_samples, feat_dim), dtype=jnp.float32)
    # Deterministic parameter init mirroring torch.randn(...) * 0.5
    centers = jax.random.normal(k2, (num_clusters, pca_dim), jnp.float32) * 0.5
    logits = jax.random.normal(k3, (num_clients, num_clusters), jnp.float32) * 0.5

    probs, loss = vwc_forward(
        proxy_points, centers, logits,
        pca_dim=pca_dim, sinkhorn_reg=sinkhorn_reg, temperature=temperature)
    jax.block_until_ready((probs, loss))

    probs_ref, loss_ref = vwc_forward_ref(
        proxy_points, centers, logits,
        pca_dim=pca_dim, sinkhorn_reg=sinkhorn_reg, temperature=temperature)
    # Tolerances account for the approx (EUP) reciprocal in the softmax
    # normalization and the MXU-expanded cdist formulation.
    np.testing.assert_allclose(np.asarray(probs), np.asarray(probs_ref),
                               rtol=2e-3, atol=2e-3)
    np.testing.assert_allclose(float(loss), float(loss_ref),
                               rtol=1e-2, atol=1e-2)

    print("KERNEL_OK")
</pallas_src>

<mosaic_0001>
module attributes {stable_mosaic.version = 11 : i64} {
  func.func @_vwc_kernel(%arg0: i32, %arg1: memref<8x128xf32, #tpu.memory_space<vmem>>, %arg2: memref<128x128xf32, #tpu.memory_space<vmem>>, %arg3: memref<8x128xf32, #tpu.memory_space<vmem>>, %arg4: memref<8x128xf32, #tpu.memory_space<vmem>>, %arg5: memref<8x128xf32, #tpu.memory_space<vmem>>, %arg6: memref<8x384xf32, #tpu.memory_space<vmem>>) attributes {dimension_semantics = [#tpu.dimension_semantics<parallel>], iteration_bounds = array<i64: 1>, scalar_prefetch = 0 : i64, scratch_operands = 0 : i64, tpu.core_type = #tpu.core_type<tc>, window_params = [{transform_indices = @transform_0, window_bounds = array<i64: 8, 128>}, {pipeline_mode = #tpu.pipeline_mode<synchronous>, transform_indices = @transform_1, window_bounds = array<i64: 128, 128>}, {pipeline_mode = #tpu.pipeline_mode<synchronous>, transform_indices = @transform_2, window_bounds = array<i64: 8, 128>}, {transform_indices = @transform_3, window_bounds = array<i64: 8, 128>}, {transform_indices = @transform_4, window_bounds = array<i64: 8, 128>}, {transform_indices = @transform_5, window_bounds = array<i64: 8, 384>}]} {
    %c0 = arith.constant 0 : index
    %c0_0 = arith.constant 0 : index
    %0 = vector.load %arg1[%c0, %c0_0] : memref<8x128xf32, #tpu.memory_space<vmem>>, vector<8x128xf32>
    %c0_1 = arith.constant 0 : index
    %c0_2 = arith.constant 0 : index
    %1 = vector.load %arg2[%c0_1, %c0_2] : memref<128x128xf32, #tpu.memory_space<vmem>>, vector<128x128xf32>
    %c0_3 = arith.constant 0 : index
    %c0_4 = arith.constant 0 : index
    %2 = vector.load %arg4[%c0_3, %c0_4] : memref<8x128xf32, #tpu.memory_space<vmem>>, vector<8x128xf32>
    %c0_5 = arith.constant 0 : index
    %c0_6 = arith.constant 0 : index
    %3 = vector.load %arg3[%c0_5, %c0_6] : memref<8x128xf32, #tpu.memory_space<vmem>>, vector<1x128xf32>
    %4 = tpu.iota {dimensions = array<i32: 1>} : vector<8x128xi32>
    %5 = tpu.iota {dimensions = array<i32: 0>} : vector<8x128xi32>
    %c4_i32 = arith.constant 4 : i32
    %6 = vector.broadcast %c4_i32 : i32 to vector<8x128xi32>
    %7 = arith.cmpi slt, %4, %6 : vector<8x128xi32>
    %c8_i32 = arith.constant 8 : i32
    %8 = arith.muli %arg0, %c8_i32 : i32
    %9 = vector.broadcast %8 : i32 to vector<8x128xi32>
    %10 = arith.addi %5, %9 : vector<8x128xi32>
    %c8_i32_7 = arith.constant 8 : i32
    %11 = vector.broadcast %c8_i32_7 : i32 to vector<8x128xi32>
    %12 = arith.cmpi slt, %10, %11 : vector<8x128xi32>
    %13 = arith.mulf %0, %0 : vector<8x128xf32>
    %cst = arith.constant dense<0.000000e+00> : vector<8xf32>
    %14 = vector.multi_reduction <add>, %13, %cst [1] : vector<8x128xf32> to vector<8xf32>
    %15 = vector.shape_cast %14 : vector<8xf32> to vector<8x1xf32>
    %cst_8 = arith.constant dense<0.000000e+00> : vector<8x128xf32>
    %16 = tpu.matmul %0, %1, %cst_8 {dimension_numbers = #tpu.dot_dimension_numbers<[1], [1], [0], [0], [0, 0, 1, 0], [], []>} : vector<8x128xf32>, vector<128x128xf32>, vector<8x128xf32> -> vector<8x128xf32>
    %17 = vector.broadcast %15 : vector<8x1xf32> to vector<8x128xf32>
    %18 = vector.broadcast %3 : vector<1x128xf32> to vector<8x128xf32>
    %19 = arith.addf %17, %18 : vector<8x128xf32>
    %cst_9 = arith.constant 2.000000e+00 : f32
    %20 = vector.broadcast %cst_9 : f32 to vector<8x128xf32>
    %21 = arith.mulf %20, %16 : vector<8x128xf32>
    %22 = arith.subf %19, %21 : vector<8x128xf32>
    %cst_10 = arith.constant 0.000000e+00 : f32
    %23 = vector.broadcast %cst_10 : f32 to vector<8x128xf32>
    %24 = arith.maximumf %22, %23 : vector<8x128xf32>
    %25 = math.sqrt %24 : vector<8x128xf32>
    %cst_11 = arith.constant 2.000000e+00 : f32
    %26 = vector.broadcast %cst_11 : f32 to vector<8x128xf32>
    %27 = arith.mulf %25, %26 : vector<8x128xf32>
    %28 = arith.subf %2, %27 : vector<8x128xf32>
    %cst_12 = arith.constant -1.000000e+30 : f32
    %29 = vector.broadcast %cst_12 : f32 to vector<8x128xf32>
    %30 = arith.select %7, %28, %29 : vector<8x128xi1>, vector<8x128xf32>
    %cst_13 = arith.constant dense<0xFF800000> : vector<8xf32>
    %31 = vector.multi_reduction <maximumf>, %30, %cst_13 [1] : vector<8x128xf32> to vector<8xf32>
    %32 = vector.shape_cast %31 : vector<8xf32> to vector<8x1xf32>
    %33 = vector.broadcast %32 : vector<8x1xf32> to vector<8x128xf32>
    %34 = arith.subf %30, %33 : vector<8x128xf32>
    %35 = math.exp %34 : vector<8x128xf32>
    %cst_14 = arith.constant dense<0.000000e+00> : vector<8xf32>
    %36 = vector.multi_reduction <add>, %35, %cst_14 [1] : vector<8x128xf32> to vector<8xf32>
    %37 = vector.shape_cast %36 : vector<8xf32> to vector<8x1xf32>
    %38 = tpu.reciprocal %37 {approx = true} : vector<8x1xf32> -> vector<8x1xf32>
    %39 = vector.broadcast %38 : vector<8x1xf32> to vector<8x128xf32>
    %40 = arith.mulf %35, %39 : vector<8x128xf32>
    %cst_15 = arith.constant 0.000000e+00 : f32
    %41 = vector.broadcast %cst_15 : f32 to vector<8x128xf32>
    %42 = arith.select %12, %40, %41 : vector<8x128xi1>, vector<8x128xf32>
    %c0_16 = arith.constant 0 : index
    %c0_17 = arith.constant 0 : index
    %43 = vector.load %arg5[%c0_16, %c0_17] : memref<8x128xf32, #tpu.memory_space<vmem>>, vector<8x128xf32>
    tpu.vector_store %arg5[%c0_16, %c0_17], %42 {strides = array<i32>} : memref<8x128xf32, #tpu.memory_space<vmem>>, vector<8x128xf32>,
    %44 = vector.broadcast %32 : vector<8x1xf32> to vector<8x128xf32>
    %45 = arith.cmpf oeq, %30, %44 : vector<8x128xf32>
    %46 = arith.andi %45, %7 : vector<8x128xi1>
    %c128_i32 = arith.constant 128 : i32
    %47 = vector.broadcast %c128_i32 : i32 to vector<8x128xi32>
    %48 = arith.select %46, %4, %47 : vector<8x128xi1>, vector<8x128xi32>
    %cst_18 = arith.constant dense<2147483647> : vector<8xi32>
    %49 = vector.multi_reduction <minsi>, %48, %cst_18 [1] : vector<8x128xi32> to vector<8xi32>
    %50 = vector.shape_cast %49 : vector<8xi32> to vector<8x1xi32>
    %51 = vector.broadcast %50 : vector<8x1xi32> to vector<8x128xi32>
    %52 = arith.cmpi eq, %4, %51 : vector<8x128xi32>
    %53 = arith.andi %52, %12 : vector<8x128xi1>
    %cst_19 = arith.constant 1.000000e+00 : f32
    %cst_20 = arith.constant 0.000000e+00 : f32
    %54 = vector.broadcast %cst_19 : f32 to vector<8x128xf32>
    %55 = vector.broadcast %cst_20 : f32 to vector<8x128xf32>
    %56 = arith.select %53, %54, %55 : vector<8x128xi1>, vector<8x128xf32>
    %57 = arith.mulf %42, %25 : vector<8x128xf32>
    %58 = tpu.concatenate %42, %56, %57 in 1 : vector<8x128xf32>, vector<8x128xf32>, vector<8x128xf32> -> vector<8x384xf32>
    %cst_21 = arith.constant 1.000000e+00 : f32
    %59 = vector.broadcast %cst_21 : f32 to vector<8x8xf32>
    %cst_22 = arith.constant dense<0.000000e+00> : vector<8x384xf32>
    %60 = tpu.matmul %59, %58, %cst_22 {dimension_numbers = #tpu.dot_dimension_numbers<[1], [0], [0], [1], [0, 0, 1, 1], [], []>} : vector<8x8xf32>, vector<8x384xf32>, vector<8x384xf32> -> vector<8x384xf32>
    %c0_23 = arith.constant 0 : index
    %c0_24 = arith.constant 0 : index
    %61 = vector.load %arg6[%c0_23, %c0_24] : memref<8x384xf32, #tpu.memory_space<vmem>>, vector<8x384xf32>
    tpu.vector_store %arg6[%c0_23, %c0_24], %60 {strides = array<i32>} : memref<8x384xf32, #tpu.memory_space<vmem>>, vector<8x384xf32>,
    return
  }
  func.func @transform_0(%arg0: i32) -> (i32, i32) {
    %c0_i32 = arith.constant 0 : i32
    %c0_i32_0 = arith.constant 0 : i32
    return %arg0, %c0_i32 : i32, i32
  }
  func.func @transform_1(%arg0: i32) -> (i32, i32) {
    %c0_i32 = arith.constant 0 : i32
    %c0_i32_0 = arith.constant 0 : i32
    %c0_i32_1 = arith.constant 0 : i32
    return %c0_i32, %c0_i32_0 : i32, i32
  }
  func.func @transform_2(%arg0: i32) -> (i32, i32) {
    %c0_i32 = arith.constant 0 : i32
    %c0_i32_0 = arith.constant 0 : i32
    %c0_i32_1 = arith.constant 0 : i32
    return %c0_i32, %c0_i32_0 : i32, i32
  }
  func.func @transform_3(%arg0: i32) -> (i32, i32) {
    %c0_i32 = arith.constant 0 : i32
    %c0_i32_0 = arith.constant 0 : i32
    return %arg0, %c0_i32 : i32, i32
  }
  func.func @transform_4(%arg0: i32) -> (i32, i32) {
    %c0_i32 = arith.constant 0 : i32
    %c0_i32_0 = arith.constant 0 : i32
    return %arg0, %c0_i32 : i32, i32
  }
  func.func @transform_5(%arg0: i32) -> (i32, i32) {
    %c0_i32 = arith.constant 0 : i32
    %c0_i32_0 = arith.constant 0 : i32
    return %arg0, %c0_i32 : i32, i32
  }
}

</mosaic_0001>

<bundles_post_ra>
// kernel: tpu_custom_call.1
= control target key start
LH: loop header
LB: loop body
LE: loop exit
PB: predicated region body
PF: predicated region fallthrough
CT: control target
= control target key end

     0   :  { %11 = vsyncpa [#allocation3], 0  ;;  %s691_s0 = inlined_call_operand.hbm [shape: f32[8,128], index: 0, kind: input, shape index: {}]   ;;  %s692_s1 = inlined_call_operand.hbm [shape: f32[128,128], index: 1, kind: input, shape index: {}]   ;;  %s693_s2 = inlined_call_operand.hbm [shape: f32[8,128], index: 2, kind: input, shape index: {}]   ;;  %s694_s3 = inlined_call_operand.hbm [shape: f32[8,128], index: 3, kind: input, shape index: {}]   ;;  %s695_s4 = inlined_call_operand.hbm [shape: f32[8,128], index: 4, kind: output, shape index: {0}]   ;;  %s696_s5 = inlined_call_operand.hbm [shape: f32[8,384], index: 5, kind: output, shape index: {1}]  }
   0x1   :  { %12 = vsyncpa [#allocation6], 0 }
   0x2   :  { %13 = vsyncpa [#allocation9], 0 }
   0x3   :  { %14 = vsyncpa [#allocation4], 0 }
   0x4   :  { %15 = vsyncpa [#allocation12], 0  ;;  %s610_s18 = smov [#allocation5]  }
   0x5   :  { %s31_s19 = sshll.u32 %s610_s18, 4  ;;  %s32_s19 = int_to_ptr.vmem [resolvable:$true] %s31_s19 }
   0x6   :  { %s488_s20 = scalar_lea.vmem %s32_s19, 2048  ;;  %p493_p1 = scmp.lt.s32.totalorder %s32_s19, %s32_s19 }
   0x7   :  { %p489_p0 = scmp.ne.s32.totalorder %s32_s19, %s488_s20  ;;  %p494_p2 = scmp.lt.s32.totalorder %s488_s20, %s488_s20 }
   0x9   :  { %p495_p3 = por %p494_p2, %p493_p1 }
   0xb   :  { %p496_p4 = pnand %p495_p3, %p489_p0 }
   0xd   :  { %499 = shalt.err (!%p496_p4)
}
   0xe   :  { %s611_s21 = smov 128   ;;  %s612_s22 = smov 8  }
   0xf   :  { %37 = dma.hbm_to_vmem [thread:$0]  %s692_s1, 2048, %s32_s19, [#allocation6], %s611_s21, %s611_s21, %s612_s22  }
  0x10   :  { %s613_s25 = smov [#allocation2]   ;;  %s614_s27 = smov [#allocation7]  }
  0x11   :  { %s22_s26 = sshll.u32 %s613_s25, 4  ;;  %s44_s28 = sshll.u32 %s614_s27, 4  ;;  %s23_s26 = int_to_ptr.vmem [resolvable:$true] %s22_s26  ;;  %s45_s28 = int_to_ptr.vmem [resolvable:$true] %s44_s28 }
  0x12   :  { %s508_s29 = scalar_lea.vmem %s23_s26, 128  ;;  %p513_p6 = scmp.lt.s32.totalorder %s23_s26, %s23_s26 }
  0x13   :  { %p509_p5 = scmp.ne.s32.totalorder %s23_s26, %s508_s29  ;;  %p514_p7 = scmp.lt.s32.totalorder %s508_s29, %s508_s29 }
  0x15   :  { %p515_p8 = por %p514_p7, %p513_p6 }
  0x17   :  { %p516_p9 = pnand %p515_p8, %p509_p5 }
  0x19   :  { %519 = shalt.err (!%p516_p9)
}
  0x1a   :  { %25 = dma.hbm_to_vmem [thread:$0]  %s691_s0, 128, %s23_s26, [#allocation3]  }
  0x1b   :  { %s528_s7 = scalar_lea.vmem %s45_s28, 128  ;;  %p533_p11 = scmp.lt.s32.totalorder %s45_s28, %s45_s28 }
  0x1c   :  { %p529_p10 = scmp.ne.s32.totalorder %s45_s28, %s528_s7  ;;  %p534_p12 = scmp.lt.s32.totalorder %s528_s7, %s528_s7 }
  0x1e   :  { %p535_p13 = por %p534_p12, %p533_p11 }
  0x20   :  { %p536_p0 = pnand %p535_p13, %p529_p10 }
  0x22   :  { %539 = shalt.err (!%p536_p0)
}
  0x23   :  { %47 = dma.hbm_to_vmem [thread:$0]  %s693_s2, 128, %s45_s28, [#allocation6]  }
  0x24   :  { %s615_s9 = smov [#allocation8]  }
  0x25   :  { %s54_s10 = sshll.u32 %s615_s9, 4  ;;  %s55_s10 = int_to_ptr.vmem [resolvable:$true] %s54_s10 }
  0x26   :  { %s548_s11 = scalar_lea.vmem %s55_s10, 128  ;;  %p553_p2 = scmp.lt.s32.totalorder %s55_s10, %s55_s10 }
  0x27   :  { %p549_p1 = scmp.ne.s32.totalorder %s55_s10, %s548_s11  ;;  %p554_p3 = scmp.lt.s32.totalorder %s548_s11, %s548_s11 }
  0x29   :  { %p555_p4 = por %p554_p3, %p553_p2 }
  0x2b   :  { %p556_p5 = pnand %p555_p4, %p549_p1 }
  0x2d   :  { %559 = shalt.err (!%p556_p5)
}
  0x2e   :  { %57 = dma.hbm_to_vmem [thread:$0]  %s694_s3, 128, %s55_s10, [#allocation9]  }
  0x2f   :  { %600 = dma.done.wait [#allocation3], 128  }
  0x30   :  { %601 = vsyncadd [#allocation3], 4294967168 }
  0x31   :  { %602 = dma.done.wait [#allocation6], 2176  }
  0x32   :  { %603 = vsyncadd [#allocation6], 4294965120 }
  0x33   :  { %604 = dma.done.wait [#allocation9], 128  }
  0x34   :  { %605 = vsyncadd [#allocation9], 4294967168  ;;  %v616_v0 = vmov 0.0   ;;  %vm617_vm0 = vmmov 0   ;;  %v86_v1 = vld [vmem:[#allocation5 + $0x78] sm:$0xff]  ;;  %v85_v2 = vld [vmem:[#allocation5 + $0x70] sm:$0xff]  ;;  %v89_v27 = vlaneseq }
  0x35   :  { %423 = vmatprep.subr.mxu0 %v616_v0  ;;  %455 = vmatprep.mubr.msk.f32.mxu0 %vm617_vm0, %v616_v0  ;;  %v70_v3 = vld [vmem:[#allocation2] sm:$0xff]  ;;  %v84_v4 = vld [vmem:[#allocation5 + $0x68] sm:$0xff]  ;;  %v83_v6 = vld [vmem:[#allocation5 + $0x60] sm:$0xff]  ;;  %vm221_vm8 = vcmask 64512   ;;  %v618_v57 = vmov 1.0   ;;  %s619_s2 = smov [#allocation10]  }
  0x36   :  { %289 = vmatprep.mubr.f32.mxu1 %v616_v0  ;;  %424 = vmatpush3.xpose.msra.mxu0 %v86_v1  ;;  %v98_v5 = vmul.f32 %v70_v3, %v70_v3  ;;  %v82_v7 = vld [vmem:[#allocation5 + $0x58] sm:$0xff]  ;;  %v81_v8 = vld [vmem:[#allocation5 + $0x50] sm:$0xff]  ;;  %v80_v9 = vld [vmem:[#allocation5 + $0x48] sm:$0xff]  ;;  %v90_v30 = vand.u32 127, %v89_v27  ;;  %s375_s3 = sshll.u32 %s619_s2, 4  ;;  %s376_s3 = int_to_ptr.vmem [resolvable:$true] %s375_s3 }
  0x37   :  { %425 = vmatprep.subr.mxu0 %v616_v0  ;;  %v79_v10 = vld [vmem:[#allocation5 + $0x40] sm:$0xff]  ;;  %v78_v11 = vld [vmem:[#allocation5 + $0x38] sm:$0xff]  ;;  %v77_v12 = vld [vmem:[#allocation5 + $0x30] sm:$0xff]  ;;  %s560_s13 = scalar_lea.vmem %s376_s3, 128  ;;  %p565_p7 = scmp.lt.s32.totalorder %s376_s3, %s376_s3 }
  0x38   :  { %99 = vadd.xlane.f32.xlu0 %v98_v5  ;;  %v76_v13 = vld [vmem:[#allocation5 + $0x28] sm:$0xff]  ;;  %v75_v14 = vld [vmem:[#allocation5 + $0x20] sm:$0xff]  ;;  %v74_v15 = vld [vmem:[#allocation5 + $0x18] sm:$0xff]  ;;  %vm93_vm3 = vcmp.lt.s32.totalorder %v90_v30, 4  ;;  %p561_p6 = scmp.ne.s32.totalorder %s376_s3, %s560_s13  ;;  %p566_p8 = scmp.lt.s32.totalorder %s560_s13, %s560_s13 }
  0x39   :  { %v73_v16 = vld [vmem:[#allocation5 + $0x10] sm:$0xff]  ;;  %v72_v17 = vld [vmem:[#allocation5 + $0x8] sm:$0xff]  ;;  %v71_v18 = vld [vmem:[#allocation5] sm:$0xff] }
  0x3a   :  { %426 = vmatpush3.xpose.msra.mxu0 %v85_v2  ;;  %v400_v19 = vld [vmem:[#allocation7] ss:$0 sm:$0xff]  ;;  %v87_v33 = vld [vmem:[#allocation8] sm:$0xff]  ;;  %p567_p9 = por %p566_p8, %p565_p7 }
  0x3b   :  { %427 = vmatprep.subr.mxu0 %v616_v0 }
  0x3c   :  { %p568_p10 = pnand %p567_p9, %p561_p6 }
  0x3e   :  { %428 = vmatpush3.xpose.msra.mxu0 %v84_v4 }
  0x3f   :  { %429 = vmatprep.subr.mxu0 %v616_v0 }
  0x42   :  { %430 = vmatpush3.xpose.msra.mxu0 %v83_v6 }
  0x43   :  { %431 = vmatprep.subr.mxu0 %v616_v0 }
  0x46   :  { %432 = vmatpush3.xpose.msra.mxu0 %v82_v7 }
  0x47   :  { %433 = vmatprep.subr.mxu0 %v616_v0 }
  0x4a   :  { %434 = vmatpush3.xpose.msra.mxu0 %v81_v8 }
  0x4b   :  { %435 = vmatprep.subr.mxu0 %v616_v0 }
  0x4e   :  { %436 = vmatpush3.xpose.msra.mxu0 %v80_v9 }
  0x4f   :  { %437 = vmatprep.subr.mxu0 %v616_v0 }
  0x52   :  { %438 = vmatpush3.xpose.msra.mxu0 %v79_v10 }
  0x53   :  { %439 = vmatprep.subr.mxu0 %v616_v0 }
  0x56   :  { %440 = vmatpush3.xpose.msra.mxu0 %v78_v11 }
  0x57   :  { %441 = vmatprep.subr.mxu0 %v616_v0 }
  0x5a   :  { %442 = vmatpush3.xpose.msra.mxu0 %v77_v12 }
  0x5b   :  { %443 = vmatprep.subr.mxu0 %v616_v0 }
  0x5e   :  { %444 = vmatpush3.xpose.msra.mxu0 %v76_v13 }
  0x5f   :  { %445 = vmatprep.subr.mxu0 %v616_v0 }
  0x62   :  { %446 = vmatpush3.xpose.msra.mxu0 %v75_v14 }
  0x63   :  { %447 = vmatprep.subr.mxu0 %v616_v0 }
  0x66   :  { %448 = vmatpush3.xpose.msra.mxu0 %v74_v15 }
  0x67   :  { %449 = vmatprep.subr.mxu0 %v616_v0 }
  0x6a   :  { %450 = vmatpush3.xpose.msra.mxu0 %v73_v16 }
  0x6b   :  { %451 = vmatprep.subr.mxu0 %v616_v0 }
  0x6e   :  { %452 = vmatpush3.xpose.msra.mxu0 %v72_v17 }
  0x6f   :  { %453 = vmatprep.subr.mxu0 %v616_v0 }
  0x72   :  { %454 = vmatpush3.xpose.msra.mxu0 %v71_v18 }
  0x75   :  { %456 = vmatmul.mubr.f32.vlgmr.msra.gmra.mxu0 %v70_v3 }
  0xc1   :  { %v100_v20 = vpop.xlane.xlu0 %99 }
  0xc2   :  { %v175_v21 = vadd.f32 %v400_v19, %v100_v20 }
 0x135   :  { %v167_v22 = vpop.f32.mrf.mxu0 }
 0x136   :  { %v176_v23 = vmul.f32 2.0, %v167_v22 }
 0x137   :  { %v457_v24 = vpop.f32.mrf.mxu0 }
 0x138   :  { %v177_v25 = vsub.f32 %v175_v21, %v176_v23 }
 0x13a   :  { %v178_v26 = vmax.f32 %v177_v25, 0.0 }
 0x13c   :  { %474 = vrsqrt.f32 %v178_v26  ;;  %vm181_vm1 = vcmp.eq.f32.partialorder %v178_v26, inf  ;;  %v184_v31 = vand.u32 2147483648, %v178_v26  ;;  %vm183_vm2 = vcmp.eq.f32.partialorder %v178_v26, 0.0 }
 0x149   :  { %v475_v28 = vpop.eup %474 }
 0x14a   :  { %v180_v29 = vmul.f32 %v475_v28, %v178_v26 }
 0x14c   :  { %v182_v32 = vsel %vm181_vm1, %v178_v26, %v180_v29 }
 0x14d   :  { %v185_v34 = vsel %vm183_vm2, %v184_v31, %v182_v32 }
 0x14e   :  { %v186_v35 = vmul.f32 2.0, %v185_v34 }
 0x150   :  { %v187_v36 = vsub.f32 %v87_v33, %v186_v35 }
 0x152   :  { %v188_v37 = vsel %vm93_vm3, %v187_v36, -1e+30 }
 0x153   :  { %189 = vmax.xlane.f32.xlu0 %v188_v37 }
 0x1dc   :  { %v190_v38 = vpop.xlane.xlu0 %189 }
 0x1dd   :  { %v191_v39 = vsub.f32 %v188_v37, %v190_v38  ;;  %vm200_vm4 = vcmp.eq.f32.partialorder %v188_v37, %v190_v38 }
 0x1de   :  { %vm201_vm5 = vmand %vm200_vm4, %vm93_vm3 }
 0x1df   :  { %v192_v40 = vmul.f32 1.442695, %v191_v39  ;;  %v202_v41 = vsel %vm201_vm5, %v90_v30, 128 }
 0x1e0   :  { %v204_v42 = vshra.s32 %v202_v41, 16  ;;  %v203_v45 = vand.u32 65535, %v202_v41 }
 0x1e1   :  { %476 = vpow2.f32 %v192_v40 }
 0x1e2   :  { %v206_v43 = vcvt.s32.f32 %v204_v42  ;;  %v205_v47 = vcvt.s32.f32 %v203_v45 }
 0x1e4   :  { %207 = vmin.xlane.f32.xlu1 %v206_v43 }
 0x1ee   :  { %v477_v44 = vpop.eup %476 }
 0x1ef   :  { %194 = vadd.xlane.f32.xlu1 %v477_v44 }
 0x26d   :  { %v208_v46 = vpop.xlane.xlu1 %207 }
 0x26e   :  { %vm209_vm6 = vcmp.eq.f32.partialorder %v206_v43, %v208_v46  ;;  %v214_v52 = vcvt.f32.s32 %v208_v46 }
 0x26f   :  { %v210_v48 = vsel %vm209_vm6, %v205_v47, inf }
 0x270   :  { %211 = vmin.xlane.f32.xlu0 %v210_v48  ;;  %v215_v54 = vshll.u32 %v214_v52, 16 }
 0x278   :  { %v195_v49 = vpop.xlane.xlu1 %194 }
 0x279   :  { %478 = vrcp.f32 %v195_v49 }
 0x286   :  { %v479_v50 = vpop.eup %478 }
 0x287   :  { %v197_v51 = vmul.f32 %v479_v50, %v477_v44 }
 0x289   :  { %199 = vst [vmem:[#allocation10] sm:$0xff] %v197_v51  ;;  %v220_v58 = vmul.f32 %v197_v51, %v185_v34 }
 0x2f9   :  { %v212_v53 = vpop.xlane.xlu0 %211 }
 0x2fa   :  { %v213_v55 = vcvt.f32.s32 %v212_v53 }
 0x2fc   :  { %v216_v56 = vadd.s32 %v215_v54, %v213_v55 }
 0x2fe   :  { %vm217_vm7 = vcmp.eq.s32.totalorder %v90_v30, %v216_v56 }
 0x2ff   :  { %401 = vmatprep.subr.msk.mxu1 %vm217_vm7, %v618_v57 }
 0x300   :  { %256 = vmatpush1.msra.mxu1 %v197_v51 }
 0x301   :  { %402 = vmatmul.mubr.msk.f32.vlgmr.msra.gmra.mxu1 %vm221_vm8, %v618_v57  ;;  %458 = vmatprep.subr.mxu1 %v616_v0 }
 0x302   :  { %459 = vmatpush3.msra.mxu1 %v220_v58  ;;  %460 = vmatprep.mubr.msk.f32.mxu1 %vm617_vm0, %v616_v0 }
 0x305   :  { %461 = vmatmul.mubr.msk.f32.vlgmr.msra.gmra.mxu1 %vm221_vm8, %v618_v57 }
 0x306   :  { %571 = shalt.err (!%p568_p10)
}
 0x307   :  { %378 = dma.vmem_to_hbm [thread:$0]  %s376_s3, 128, %s695_s4, [#allocation4]  }
 0x308   :  { %s620_s16 = smov [#allocation11]  }
 0x309   :  { %s385_s17 = sshll.u32 %s620_s16, 4  ;;  %s386_s17 = int_to_ptr.vmem [resolvable:$true] %s385_s17 }
 0x30a   :  { %s580_s18 = scalar_lea.vmem %s386_s17, 384  ;;  %p585_p12 = scmp.lt.s32.totalorder %s386_s17, %s386_s17 }
 0x30b   :  { %p581_p11 = scmp.ne.s32.totalorder %s386_s17, %s580_s18  ;;  %p586_p13 = scmp.lt.s32.totalorder %s580_s18, %s580_s18 }
 0x30d   :  { %p587_p0 = por %p586_p13, %p585_p12 }
 0x30f   :  { %p588_p1 = pnand %p587_p0, %p581_p11 }
 0x3c1   :  { %v291_v59 = vpop.f32.mrf.mxu1 }
 0x3c2   :  { %366 = vst [vmem:[#allocation11] sm:$0xff] %v291_v59 }
 0x3c3   :  { %v293_v60 = vpop.f32.mrf.mxu1 }
 0x3c4   :  { %367 = vst [vmem:[#allocation11 + $0x8] sm:$0xff] %v293_v60 }
 0x3c5   :  { %v362_v61 = vpop.f32.mrf.mxu1 }
 0x3c6   :  { %368 = vst [vmem:[#allocation11 + $0x10] sm:$0xff] %v362_v61 }
 0x3c7   :  { %v462_v62 = vpop.f32.mrf.mxu1 }
 0x3c8   :  { %591 = shalt.err (!%p588_p1)
}
 0x3c9   :  { %388 = dma.vmem_to_hbm [thread:$0]  %s386_s17, 384, %s696_s5, [#allocation12]  }
 0x3ca   :  { %606 = dma.done.wait [#allocation4], 128  }
 0x3cb   :  { %607 = vsyncadd [#allocation4], 4294967168 }
 0x3cc   :  { %608 = dma.done.wait [#allocation12], 384  }
 0x3cd   :  { %609 = vsyncadd [#allocation12], 4294966912 }
 0x3ce   :  { %395 = vsyncpa [#allocation3], 1 }
 0x3cf   :  { %396 = vsyncpa [#allocation6], 1 }
 0x3d0   :  { %397 = vsyncpa [#allocation9], 1 }
 0x3d1   :  { %398 = vsyncpa [#allocation4], 1 }
 0x3d2   :  { %399 = vsyncpa [#allocation12], 1 }

</bundles_post_ra>
